<compile_context>
chip_gen: v7x
topology: tpu7x:2x2x1
jax: 0.10.0
libtpu: 0.0.40
codegen_flags: <defaults>
</compile_context>

<pallas_src>
import functools

import jax
import jax.numpy as jnp
from jax.experimental import pallas as pl
from jax.experimental.pallas import tpu as pltpu


def _round_up(x, m):
    return (x + m - 1) // m * m


def _gather_rows_kernel(idx_ref, emb_hbm, out_ref, sem, *, rows_per_step, vocab):
    """Gather `rows_per_step` embedding-table rows straight into the out block.

    idx_ref : (n_pad,) int32 in SMEM (scalar prefetch) -- flat token ids
    emb_hbm : (V, D) ref left in HBM (pl.ANY)          -- embedding table
    out_ref : (rows_per_step, D) VMEM output block     -- DMA destination
    sem     : (1,) DMA semaphore shared by the equal-sized row copies
    """
    step = pl.program_id(0)
    base = step * rows_per_step

    # Burst of row DMAs HBM -> output block. Static unroll: r is a Python int,
    # so every copy is a compile-time descriptor; their latencies overlap.
    for r in range(rows_per_step):
        row = idx_ref[base + r]
        # Clamp like a gather would (avoids OOB DMA on bad / pad token ids).
        row = jnp.minimum(jnp.maximum(row, 0), vocab - 1)
        pltpu.make_async_copy(
            emb_hbm.at[pl.ds(row, 1), :],
            out_ref.at[pl.ds(r, 1), :],
            sem.at[0],
        ).start()

    # Single aggregate wait: the row copies exactly tile out_ref, so a wait
    # sized for the full (rows_per_step, D) block consumes exactly the bytes
    # the burst signals. (The src ref of a wait-only descriptor is irrelevant.)
    pltpu.make_async_copy(out_ref, out_ref, sem.at[0]).wait()


def fused_embedding_lookup(question, answer, emb_table, *, rows_per_step=256):
    """Embed question and answer token indices with one fused gather kernel."""
    V, D = emb_table.shape
    nq, na = question.size, answer.size
    n_rows = nq + na
    itemsize = jnp.dtype(emb_table.dtype).itemsize

    # dtype-aware sublane multiple: f32 -> 8, bf16 -> 16, int8/fp8 -> 32.
    sub = max(8, 32 // itemsize)

    # Row-chunk geometry: big steps amortize per-step overhead, but guarantee
    # >= 2 grid steps whenever there is enough work so the ("parallel",) axis
    # gives both v7x TensorCores something to do (irrelevant on v5e/v6e).
    half = _round_up(max(-(-n_rows // 2), sub), sub)
    rows_per_step = _round_up(min(rows_per_step, half), sub)
    n_pad = _round_up(n_rows, rows_per_step)
    n_steps = n_pad // rows_per_step

    idx = jnp.concatenate(
        [question.reshape(-1), answer.reshape(-1)]).astype(jnp.int32)
    if n_pad != n_rows:
        idx = jnp.pad(idx, (0, n_pad - n_rows))   # pad rows gather row 0, discarded

    # VMEM budget from actual usage (double-buffered out block + headroom),
    # kept under the 32 MiB scoped default of every generation (v7x: 64 MiB).
    out_block_bytes = rows_per_step * D * itemsize
    vmem_limit = int(min(32 << 20, max(8 << 20, 4 * out_block_bytes)))

    kernel = functools.partial(
        _gather_rows_kernel, rows_per_step=rows_per_step, vocab=V)

    out = pl.pallas_call(
        kernel,
        out_shape=jax.ShapeDtypeStruct((n_pad, D), emb_table.dtype),
        grid_spec=pltpu.PrefetchScalarGridSpec(
            num_scalar_prefetch=1,
            grid=(n_steps,),
            in_specs=[pl.BlockSpec(memory_space=pl.ANY)],   # table stays in HBM
            out_specs=pl.BlockSpec((rows_per_step, D),
                                   lambda i, idx_ref: (i, 0)),
            scratch_shapes=[pltpu.SemaphoreType.DMA((1,))],
        ),
        compiler_params=pltpu.CompilerParams(
            dimension_semantics=("parallel",),   # row chunks split across TCs
            vmem_limit_bytes=vmem_limit,
        ),
    )(idx, emb_table)

    q_emb = out[:nq].reshape(question.shape + (D,))
    a_emb = out[nq:n_rows].reshape(answer.shape + (D,))
    return q_emb, a_emb


class EncoderBase:
    """JAX/Pallas counterpart of the PyTorch EncoderBase.

    Stores the pretrained embedding table and a config object; forward embeds
    question and answer token-index tensors with one fused Pallas gather kernel.
    All per-call table prep is hoisted here (the table is stored once as a
    device array and never padded or copied again in forward).
    """

    def __init__(self, pretrained_emb, config):
        self.pretrained_emb = jnp.asarray(pretrained_emb)   # (V, D)
        self._config = config

    def forward(self, question, answer):
        # question, answer: (B, S) int32 token indices (tokenized + padded)
        return fused_embedding_lookup(question, answer, self.pretrained_emb)

    __call__ = forward


if __name__ == "__main__":
    # Small, deterministic shapes consistent with the module's interface.
    B, S, V, D = 2, 8, 32, 32

    key = jax.random.PRNGKey(0)
    k_emb, k_q, k_a = jax.random.split(key, 3)

    # Deterministic "pretrained" embedding table (synthetic, not a checkpoint).
    pretrained_emb = jax.random.normal(k_emb, (V, D), dtype=jnp.float32)

    question = jax.random.randint(k_q, (B, S), minval=0, maxval=V, dtype=jnp.int32)
    answer = jax.random.randint(k_a, (B, S), minval=0, maxval=V, dtype=jnp.int32)

    config = {"vocab_size": V, "hidden_size": D, "max_token": S}
    encoder = EncoderBase(pretrained_emb, config)

    q_emb, a_emb = encoder(question, answer)
    q_emb = jax.block_until_ready(q_emb)
    a_emb = jax.block_until_ready(a_emb)

    # Correctness check against plain-JAX embedding lookup (gather).
    ref_q = pretrained_emb[question]
    ref_a = pretrained_emb[answer]
    assert q_emb.shape == (B, S, D) and a_emb.shape == (B, S, D)
    assert jnp.allclose(q_emb, ref_q, atol=1e-6)
    assert jnp.allclose(a_emb, ref_a, atol=1e-6)

    print("KERNEL_OK")
</pallas_src>

<mosaic_0001>
module attributes {stable_mosaic.version = 11 : i64} {
  func.func @_gather_rows_kernel(%arg0: i32, %arg1: memref<32xi32, #tpu.memory_space<smem>>, %arg2: memref<32x32xf32, #tpu.memory_space<any>>, %arg3: memref<16x32xf32, #tpu.memory_space<vmem>>, %arg4: memref<1x!tpu.dma_semaphore, #tpu.memory_space<semaphore_mem>>) attributes {dimension_semantics = [#tpu.dimension_semantics<parallel>], iteration_bounds = array<i64: 2>, scalar_prefetch = 1 : i64, scratch_operands = 1 : i64, tpu.core_type = #tpu.core_type<tc>, window_params = [{}, {transform_indices = @transform_1, window_bounds = array<i64: 16, 32>}]} {
    %c16_i32 = arith.constant 16 : i32
    %0 = arith.muli %arg0, %c16_i32 : i32
    %c0_i32 = arith.constant 0 : i32
    %1 = arith.addi %0, %c0_i32 : i32
    %2 = arith.index_cast %1 : i32 to index
    %3 = memref.load %arg1[%2] : memref<32xi32, #tpu.memory_space<smem>>
    %c0_i32_0 = arith.constant 0 : i32
    %4 = arith.maxsi %3, %c0_i32_0 : i32
    %c31_i32 = arith.constant 31 : i32
    %5 = arith.minsi %4, %c31_i32 : i32
    %c0_i32_1 = arith.constant 0 : i32
    %c0_i32_2 = arith.constant 0 : i32
    %6 = tpu.memref_slice %arg2[%5, %c0_i32_2] : memref<32x32xf32, #tpu.memory_space<any>> -> memref<1x32xf32, #tpu.memory_space<any>>
    %c0_i32_3 = arith.constant 0 : i32
    %c0_i32_4 = arith.constant 0 : i32
    %7 = tpu.memref_slice %arg3[%c0_i32_3, %c0_i32_4] : memref<16x32xf32, #tpu.memory_space<vmem>> -> memref<1x32xf32, #tpu.memory_space<vmem>>
    %8 = tpu.memref_slice %arg4[%c0_i32_1] : memref<1x!tpu.dma_semaphore, #tpu.memory_space<semaphore_mem>> -> memref<1x!tpu.dma_semaphore, #tpu.memory_space<semaphore_mem>>
    %9 = tpu.memref_squeeze %8 : memref<1x!tpu.dma_semaphore, #tpu.memory_space<semaphore_mem>> -> memref<!tpu.dma_semaphore, #tpu.memory_space<semaphore_mem>>
    tpu.enqueue_dma source(%6 : memref<1x32xf32, #tpu.memory_space<any>>) target(%7 : memref<1x32xf32, #tpu.memory_space<vmem>>) target_semaphore(%9 : memref<!tpu.dma_semaphore, #tpu.memory_space<semaphore_mem>>)
    %c1_i32 = arith.constant 1 : i32
    %10 = arith.addi %0, %c1_i32 : i32
    %11 = arith.index_cast %10 : i32 to index
    %12 = memref.load %arg1[%11] : memref<32xi32, #tpu.memory_space<smem>>
    %c0_i32_5 = arith.constant 0 : i32
    %13 = arith.maxsi %12, %c0_i32_5 : i32
    %c31_i32_6 = arith.constant 31 : i32
    %14 = arith.minsi %13, %c31_i32_6 : i32
    %c0_i32_7 = arith.constant 0 : i32
    %c0_i32_8 = arith.constant 0 : i32
    %15 = tpu.memref_slice %arg2[%14, %c0_i32_8] : memref<32x32xf32, #tpu.memory_space<any>> -> memref<1x32xf32, #tpu.memory_space<any>>
    %c1_i32_9 = arith.constant 1 : i32
    %c0_i32_10 = arith.constant 0 : i32
    %16 = tpu.memref_slice %arg3[%c1_i32_9, %c0_i32_10] : memref<16x32xf32, #tpu.memory_space<vmem>> -> memref<1x32xf32, #tpu.memory_space<vmem>>
    %17 = tpu.memref_slice %arg4[%c0_i32_7] : memref<1x!tpu.dma_semaphore, #tpu.memory_space<semaphore_mem>> -> memref<1x!tpu.dma_semaphore, #tpu.memory_space<semaphore_mem>>
    %18 = tpu.memref_squeeze %17 : memref<1x!tpu.dma_semaphore, #tpu.memory_space<semaphore_mem>> -> memref<!tpu.dma_semaphore, #tpu.memory_space<semaphore_mem>>
    tpu.enqueue_dma source(%15 : memref<1x32xf32, #tpu.memory_space<any>>) target(%16 : memref<1x32xf32, #tpu.memory_space<vmem>>) target_semaphore(%18 : memref<!tpu.dma_semaphore, #tpu.memory_space<semaphore_mem>>)
    %c2_i32 = arith.constant 2 : i32
    %19 = arith.addi %0, %c2_i32 : i32
    %20 = arith.index_cast %19 : i32 to index
    %21 = memref.load %arg1[%20] : memref<32xi32, #tpu.memory_space<smem>>
    %c0_i32_11 = arith.constant 0 : i32
    %22 = arith.maxsi %21, %c0_i32_11 : i32
    %c31_i32_12 = arith.constant 31 : i32
    %23 = arith.minsi %22, %c31_i32_12 : i32
    %c0_i32_13 = arith.constant 0 : i32
    %c0_i32_14 = arith.constant 0 : i32
    %24 = tpu.memref_slice %arg2[%23, %c0_i32_14] : memref<32x32xf32, #tpu.memory_space<any>> -> memref<1x32xf32, #tpu.memory_space<any>>
    %c2_i32_15 = arith.constant 2 : i32
    %c0_i32_16 = arith.constant 0 : i32
    %25 = tpu.memref_slice %arg3[%c2_i32_15, %c0_i32_16] : memref<16x32xf32, #tpu.memory_space<vmem>> -> memref<1x32xf32, #tpu.memory_space<vmem>>
    %26 = tpu.memref_slice %arg4[%c0_i32_13] : memref<1x!tpu.dma_semaphore, #tpu.memory_space<semaphore_mem>> -> memref<1x!tpu.dma_semaphore, #tpu.memory_space<semaphore_mem>>
    %27 = tpu.memref_squeeze %26 : memref<1x!tpu.dma_semaphore, #tpu.memory_space<semaphore_mem>> -> memref<!tpu.dma_semaphore, #tpu.memory_space<semaphore_mem>>
    tpu.enqueue_dma source(%24 : memref<1x32xf32, #tpu.memory_space<any>>) target(%25 : memref<1x32xf32, #tpu.memory_space<vmem>>) target_semaphore(%27 : memref<!tpu.dma_semaphore, #tpu.memory_space<semaphore_mem>>)
    %c3_i32 = arith.constant 3 : i32
    %28 = arith.addi %0, %c3_i32 : i32
    %29 = arith.index_cast %28 : i32 to index
    %30 = memref.load %arg1[%29] : memref<32xi32, #tpu.memory_space<smem>>
    %c0_i32_17 = arith.constant 0 : i32
    %31 = arith.maxsi %30, %c0_i32_17 : i32
    %c31_i32_18 = arith.constant 31 : i32
    %32 = arith.minsi %31, %c31_i32_18 : i32
    %c0_i32_19 = arith.constant 0 : i32
    %c0_i32_20 = arith.constant 0 : i32
    %33 = tpu.memref_slice %arg2[%32, %c0_i32_20] : memref<32x32xf32, #tpu.memory_space<any>> -> memref<1x32xf32, #tpu.memory_space<any>>
    %c3_i32_21 = arith.constant 3 : i32
    %c0_i32_22 = arith.constant 0 : i32
    %34 = tpu.memref_slice %arg3[%c3_i32_21, %c0_i32_22] : memref<16x32xf32, #tpu.memory_space<vmem>> -> memref<1x32xf32, #tpu.memory_space<vmem>>
    %35 = tpu.memref_slice %arg4[%c0_i32_19] : memref<1x!tpu.dma_semaphore, #tpu.memory_space<semaphore_mem>> -> memref<1x!tpu.dma_semaphore, #tpu.memory_space<semaphore_mem>>
    %36 = tpu.memref_squeeze %35 : memref<1x!tpu.dma_semaphore, #tpu.memory_space<semaphore_mem>> -> memref<!tpu.dma_semaphore, #tpu.memory_space<semaphore_mem>>
    tpu.enqueue_dma source(%33 : memref<1x32xf32, #tpu.memory_space<any>>) target(%34 : memref<1x32xf32, #tpu.memory_space<vmem>>) target_semaphore(%36 : memref<!tpu.dma_semaphore, #tpu.memory_space<semaphore_mem>>)
    %c4_i32 = arith.constant 4 : i32
    %37 = arith.addi %0, %c4_i32 : i32
    %38 = arith.index_cast %37 : i32 to index
    %39 = memref.load %arg1[%38] : memref<32xi32, #tpu.memory_space<smem>>
    %c0_i32_23 = arith.constant 0 : i32
    %40 = arith.maxsi %39, %c0_i32_23 : i32
    %c31_i32_24 = arith.constant 31 : i32
    %41 = arith.minsi %40, %c31_i32_24 : i32
    %c0_i32_25 = arith.constant 0 : i32
    %c0_i32_26 = arith.constant 0 : i32
    %42 = tpu.memref_slice %arg2[%41, %c0_i32_26] : memref<32x32xf32, #tpu.memory_space<any>> -> memref<1x32xf32, #tpu.memory_space<any>>
    %c4_i32_27 = arith.constant 4 : i32
    %c0_i32_28 = arith.constant 0 : i32
    %43 = tpu.memref_slice %arg3[%c4_i32_27, %c0_i32_28] : memref<16x32xf32, #tpu.memory_space<vmem>> -> memref<1x32xf32, #tpu.memory_space<vmem>>
    %44 = tpu.memref_slice %arg4[%c0_i32_25] : memref<1x!tpu.dma_semaphore, #tpu.memory_space<semaphore_mem>> -> memref<1x!tpu.dma_semaphore, #tpu.memory_space<semaphore_mem>>
    %45 = tpu.memref_squeeze %44 : memref<1x!tpu.dma_semaphore, #tpu.memory_space<semaphore_mem>> -> memref<!tpu.dma_semaphore, #tpu.memory_space<semaphore_mem>>
    tpu.enqueue_dma source(%42 : memref<1x32xf32, #tpu.memory_space<any>>) target(%43 : memref<1x32xf32, #tpu.memory_space<vmem>>) target_semaphore(%45 : memref<!tpu.dma_semaphore, #tpu.memory_space<semaphore_mem>>)
    %c5_i32 = arith.constant 5 : i32
    %46 = arith.addi %0, %c5_i32 : i32
    %47 = arith.index_cast %46 : i32 to index
    %48 = memref.load %arg1[%47] : memref<32xi32, #tpu.memory_space<smem>>
    %c0_i32_29 = arith.constant 0 : i32
    %49 = arith.maxsi %48, %c0_i32_29 : i32
    %c31_i32_30 = arith.constant 31 : i32
    %50 = arith.minsi %49, %c31_i32_30 : i32
    %c0_i32_31 = arith.constant 0 : i32
    %c0_i32_32 = arith.constant 0 : i32
    %51 = tpu.memref_slice %arg2[%50, %c0_i32_32] : memref<32x32xf32, #tpu.memory_space<any>> -> memref<1x32xf32, #tpu.memory_space<any>>
    %c5_i32_33 = arith.constant 5 : i32
    %c0_i32_34 = arith.constant 0 : i32
    %52 = tpu.memref_slice %arg3[%c5_i32_33, %c0_i32_34] : memref<16x32xf32, #tpu.memory_space<vmem>> -> memref<1x32xf32, #tpu.memory_space<vmem>>
    %53 = tpu.memref_slice %arg4[%c0_i32_31] : memref<1x!tpu.dma_semaphore, #tpu.memory_space<semaphore_mem>> -> memref<1x!tpu.dma_semaphore, #tpu.memory_space<semaphore_mem>>
    %54 = tpu.memref_squeeze %53 : memref<1x!tpu.dma_semaphore, #tpu.memory_space<semaphore_mem>> -> memref<!tpu.dma_semaphore, #tpu.memory_space<semaphore_mem>>
    tpu.enqueue_dma source(%51 : memref<1x32xf32, #tpu.memory_space<any>>) target(%52 : memref<1x32xf32, #tpu.memory_space<vmem>>) target_semaphore(%54 : memref<!tpu.dma_semaphore, #tpu.memory_space<semaphore_mem>>)
    %c6_i32 = arith.constant 6 : i32
    %55 = arith.addi %0, %c6_i32 : i32
    %56 = arith.index_cast %55 : i32 to index
    %57 = memref.load %arg1[%56] : memref<32xi32, #tpu.memory_space<smem>>
    %c0_i32_35 = arith.constant 0 : i32
    %58 = arith.maxsi %57, %c0_i32_35 : i32
    %c31_i32_36 = arith.constant 31 : i32
    %59 = arith.minsi %58, %c31_i32_36 : i32
    %c0_i32_37 = arith.constant 0 : i32
    %c0_i32_38 = arith.constant 0 : i32
    %60 = tpu.memref_slice %arg2[%59, %c0_i32_38] : memref<32x32xf32, #tpu.memory_space<any>> -> memref<1x32xf32, #tpu.memory_space<any>>
    %c6_i32_39 = arith.constant 6 : i32
    %c0_i32_40 = arith.constant 0 : i32
    %61 = tpu.memref_slice %arg3[%c6_i32_39, %c0_i32_40] : memref<16x32xf32, #tpu.memory_space<vmem>> -> memref<1x32xf32, #tpu.memory_space<vmem>>
    %62 = tpu.memref_slice %arg4[%c0_i32_37] : memref<1x!tpu.dma_semaphore, #tpu.memory_space<semaphore_mem>> -> memref<1x!tpu.dma_semaphore, #tpu.memory_space<semaphore_mem>>
    %63 = tpu.memref_squeeze %62 : memref<1x!tpu.dma_semaphore, #tpu.memory_space<semaphore_mem>> -> memref<!tpu.dma_semaphore, #tpu.memory_space<semaphore_mem>>
    tpu.enqueue_dma source(%60 : memref<1x32xf32, #tpu.memory_space<any>>) target(%61 : memref<1x32xf32, #tpu.memory_space<vmem>>) target_semaphore(%63 : memref<!tpu.dma_semaphore, #tpu.memory_space<semaphore_mem>>)
    %c7_i32 = arith.constant 7 : i32
    %64 = arith.addi %0, %c7_i32 : i32
    %65 = arith.index_cast %64 : i32 to index
    %66 = memref.load %arg1[%65] : memref<32xi32, #tpu.memory_space<smem>>
    %c0_i32_41 = arith.constant 0 : i32
    %67 = arith.maxsi %66, %c0_i32_41 : i32
    %c31_i32_42 = arith.constant 31 : i32
    %68 = arith.minsi %67, %c31_i32_42 : i32
    %c0_i32_43 = arith.constant 0 : i32
    %c0_i32_44 = arith.constant 0 : i32
    %69 = tpu.memref_slice %arg2[%68, %c0_i32_44] : memref<32x32xf32, #tpu.memory_space<any>> -> memref<1x32xf32, #tpu.memory_space<any>>
    %c7_i32_45 = arith.constant 7 : i32
    %c0_i32_46 = arith.constant 0 : i32
    %70 = tpu.memref_slice %arg3[%c7_i32_45, %c0_i32_46] : memref<16x32xf32, #tpu.memory_space<vmem>> -> memref<1x32xf32, #tpu.memory_space<vmem>>
    %71 = tpu.memref_slice %arg4[%c0_i32_43] : memref<1x!tpu.dma_semaphore, #tpu.memory_space<semaphore_mem>> -> memref<1x!tpu.dma_semaphore, #tpu.memory_space<semaphore_mem>>
    %72 = tpu.memref_squeeze %71 : memref<1x!tpu.dma_semaphore, #tpu.memory_space<semaphore_mem>> -> memref<!tpu.dma_semaphore, #tpu.memory_space<semaphore_mem>>
    tpu.enqueue_dma source(%69 : memref<1x32xf32, #tpu.memory_space<any>>) target(%70 : memref<1x32xf32, #tpu.memory_space<vmem>>) target_semaphore(%72 : memref<!tpu.dma_semaphore, #tpu.memory_space<semaphore_mem>>)
    %c8_i32 = arith.constant 8 : i32
    %73 = arith.addi %0, %c8_i32 : i32
    %74 = arith.index_cast %73 : i32 to index
    %75 = memref.load %arg1[%74] : memref<32xi32, #tpu.memory_space<smem>>
    %c0_i32_47 = arith.constant 0 : i32
    %76 = arith.maxsi %75, %c0_i32_47 : i32
    %c31_i32_48 = arith.constant 31 : i32
    %77 = arith.minsi %76, %c31_i32_48 : i32
    %c0_i32_49 = arith.constant 0 : i32
    %c0_i32_50 = arith.constant 0 : i32
    %78 = tpu.memref_slice %arg2[%77, %c0_i32_50] : memref<32x32xf32, #tpu.memory_space<any>> -> memref<1x32xf32, #tpu.memory_space<any>>
    %c8_i32_51 = arith.constant 8 : i32
    %c0_i32_52 = arith.constant 0 : i32
    %79 = tpu.memref_slice %arg3[%c8_i32_51, %c0_i32_52] : memref<16x32xf32, #tpu.memory_space<vmem>> -> memref<1x32xf32, #tpu.memory_space<vmem>>
    %80 = tpu.memref_slice %arg4[%c0_i32_49] : memref<1x!tpu.dma_semaphore, #tpu.memory_space<semaphore_mem>> -> memref<1x!tpu.dma_semaphore, #tpu.memory_space<semaphore_mem>>
    %81 = tpu.memref_squeeze %80 : memref<1x!tpu.dma_semaphore, #tpu.memory_space<semaphore_mem>> -> memref<!tpu.dma_semaphore, #tpu.memory_space<semaphore_mem>>
    tpu.enqueue_dma source(%78 : memref<1x32xf32, #tpu.memory_space<any>>) target(%79 : memref<1x32xf32, #tpu.memory_space<vmem>>) target_semaphore(%81 : memref<!tpu.dma_semaphore, #tpu.memory_space<semaphore_mem>>)
    %c9_i32 = arith.constant 9 : i32
    %82 = arith.addi %0, %c9_i32 : i32
    %83 = arith.index_cast %82 : i32 to index
    %84 = memref.load %arg1[%83] : memref<32xi32, #tpu.memory_space<smem>>
    %c0_i32_53 = arith.constant 0 : i32
    %85 = arith.maxsi %84, %c0_i32_53 : i32
    %c31_i32_54 = arith.constant 31 : i32
    %86 = arith.minsi %85, %c31_i32_54 : i32
    %c0_i32_55 = arith.constant 0 : i32
    %c0_i32_56 = arith.constant 0 : i32
    %87 = tpu.memref_slice %arg2[%86, %c0_i32_56] : memref<32x32xf32, #tpu.memory_space<any>> -> memref<1x32xf32, #tpu.memory_space<any>>
    %c9_i32_57 = arith.constant 9 : i32
    %c0_i32_58 = arith.constant 0 : i32
    %88 = tpu.memref_slice %arg3[%c9_i32_57, %c0_i32_58] : memref<16x32xf32, #tpu.memory_space<vmem>> -> memref<1x32xf32, #tpu.memory_space<vmem>>
    %89 = tpu.memref_slice %arg4[%c0_i32_55] : memref<1x!tpu.dma_semaphore, #tpu.memory_space<semaphore_mem>> -> memref<1x!tpu.dma_semaphore, #tpu.memory_space<semaphore_mem>>
    %90 = tpu.memref_squeeze %89 : memref<1x!tpu.dma_semaphore, #tpu.memory_space<semaphore_mem>> -> memref<!tpu.dma_semaphore, #tpu.memory_space<semaphore_mem>>
    tpu.enqueue_dma source(%87 : memref<1x32xf32, #tpu.memory_space<any>>) target(%88 : memref<1x32xf32, #tpu.memory_space<vmem>>) target_semaphore(%90 : memref<!tpu.dma_semaphore, #tpu.memory_space<semaphore_mem>>)
    %c10_i32 = arith.constant 10 : i32
    %91 = arith.addi %0, %c10_i32 : i32
    %92 = arith.index_cast %91 : i32 to index
    %93 = memref.load %arg1[%92] : memref<32xi32, #tpu.memory_space<smem>>
    %c0_i32_59 = arith.constant 0 : i32
    %94 = arith.maxsi %93, %c0_i32_59 : i32
    %c31_i32_60 = arith.constant 31 : i32
    %95 = arith.minsi %94, %c31_i32_60 : i32
    %c0_i32_61 = arith.constant 0 : i32
    %c0_i32_62 = arith.constant 0 : i32
    %96 = tpu.memref_slice %arg2[%95, %c0_i32_62] : memref<32x32xf32, #tpu.memory_space<any>> -> memref<1x32xf32, #tpu.memory_space<any>>
    %c10_i32_63 = arith.constant 10 : i32
    %c0_i32_64 = arith.constant 0 : i32
    %97 = tpu.memref_slice %arg3[%c10_i32_63, %c0_i32_64] : memref<16x32xf32, #tpu.memory_space<vmem>> -> memref<1x32xf32, #tpu.memory_space<vmem>>
    %98 = tpu.memref_slice %arg4[%c0_i32_61] : memref<1x!tpu.dma_semaphore, #tpu.memory_space<semaphore_mem>> -> memref<1x!tpu.dma_semaphore, #tpu.memory_space<semaphore_mem>>
    %99 = tpu.memref_squeeze %98 : memref<1x!tpu.dma_semaphore, #tpu.memory_space<semaphore_mem>> -> memref<!tpu.dma_semaphore, #tpu.memory_space<semaphore_mem>>
    tpu.enqueue_dma source(%96 : memref<1x32xf32, #tpu.memory_space<any>>) target(%97 : memref<1x32xf32, #tpu.memory_space<vmem>>) target_semaphore(%99 : memref<!tpu.dma_semaphore, #tpu.memory_space<semaphore_mem>>)
    %c11_i32 = arith.constant 11 : i32
    %100 = arith.addi %0, %c11_i32 : i32
    %101 = arith.index_cast %100 : i32 to index
    %102 = memref.load %arg1[%101] : memref<32xi32, #tpu.memory_space<smem>>
    %c0_i32_65 = arith.constant 0 : i32
    %103 = arith.maxsi %102, %c0_i32_65 : i32
    %c31_i32_66 = arith.constant 31 : i32
    %104 = arith.minsi %103, %c31_i32_66 : i32
    %c0_i32_67 = arith.constant 0 : i32
    %c0_i32_68 = arith.constant 0 : i32
    %105 = tpu.memref_slice %arg2[%104, %c0_i32_68] : memref<32x32xf32, #tpu.memory_space<any>> -> memref<1x32xf32, #tpu.memory_space<any>>
    %c11_i32_69 = arith.constant 11 : i32
    %c0_i32_70 = arith.constant 0 : i32
    %106 = tpu.memref_slice %arg3[%c11_i32_69, %c0_i32_70] : memref<16x32xf32, #tpu.memory_space<vmem>> -> memref<1x32xf32, #tpu.memory_space<vmem>>
    %107 = tpu.memref_slice %arg4[%c0_i32_67] : memref<1x!tpu.dma_semaphore, #tpu.memory_space<semaphore_mem>> -> memref<1x!tpu.dma_semaphore, #tpu.memory_space<semaphore_mem>>
    %108 = tpu.memref_squeeze %107 : memref<1x!tpu.dma_semaphore, #tpu.memory_space<semaphore_mem>> -> memref<!tpu.dma_semaphore, #tpu.memory_space<semaphore_mem>>
    tpu.enqueue_dma source(%105 : memref<1x32xf32, #tpu.memory_space<any>>) target(%106 : memref<1x32xf32, #tpu.memory_space<vmem>>) target_semaphore(%108 : memref<!tpu.dma_semaphore, #tpu.memory_space<semaphore_mem>>)
    %c12_i32 = arith.constant 12 : i32
    %109 = arith.addi %0, %c12_i32 : i32
    %110 = arith.index_cast %109 : i32 to index
    %111 = memref.load %arg1[%110] : memref<32xi32, #tpu.memory_space<smem>>
    %c0_i32_71 = arith.constant 0 : i32
    %112 = arith.maxsi %111, %c0_i32_71 : i32
    %c31_i32_72 = arith.constant 31 : i32
    %113 = arith.minsi %112, %c31_i32_72 : i32
    %c0_i32_73 = arith.constant 0 : i32
    %c0_i32_74 = arith.constant 0 : i32
    %114 = tpu.memref_slice %arg2[%113, %c0_i32_74] : memref<32x32xf32, #tpu.memory_space<any>> -> memref<1x32xf32, #tpu.memory_space<any>>
    %c12_i32_75 = arith.constant 12 : i32
    %c0_i32_76 = arith.constant 0 : i32
    %115 = tpu.memref_slice %arg3[%c12_i32_75, %c0_i32_76] : memref<16x32xf32, #tpu.memory_space<vmem>> -> memref<1x32xf32, #tpu.memory_space<vmem>>
    %116 = tpu.memref_slice %arg4[%c0_i32_73] : memref<1x!tpu.dma_semaphore, #tpu.memory_space<semaphore_mem>> -> memref<1x!tpu.dma_semaphore, #tpu.memory_space<semaphore_mem>>
    %117 = tpu.memref_squeeze %116 : memref<1x!tpu.dma_semaphore, #tpu.memory_space<semaphore_mem>> -> memref<!tpu.dma_semaphore, #tpu.memory_space<semaphore_mem>>
    tpu.enqueue_dma source(%114 : memref<1x32xf32, #tpu.memory_space<any>>) target(%115 : memref<1x32xf32, #tpu.memory_space<vmem>>) target_semaphore(%117 : memref<!tpu.dma_semaphore, #tpu.memory_space<semaphore_mem>>)
    %c13_i32 = arith.constant 13 : i32
    %118 = arith.addi %0, %c13_i32 : i32
    %119 = arith.index_cast %118 : i32 to index
    %120 = memref.load %arg1[%119] : memref<32xi32, #tpu.memory_space<smem>>
    %c0_i32_77 = arith.constant 0 : i32
    %121 = arith.maxsi %120, %c0_i32_77 : i32
    %c31_i32_78 = arith.constant 31 : i32
    %122 = arith.minsi %121, %c31_i32_78 : i32
    %c0_i32_79 = arith.constant 0 : i32
    %c0_i32_80 = arith.constant 0 : i32
    %123 = tpu.memref_slice %arg2[%122, %c0_i32_80] : memref<32x32xf32, #tpu.memory_space<any>> -> memref<1x32xf32, #tpu.memory_space<any>>
    %c13_i32_81 = arith.constant 13 : i32
    %c0_i32_82 = arith.constant 0 : i32
    %124 = tpu.memref_slice %arg3[%c13_i32_81, %c0_i32_82] : memref<16x32xf32, #tpu.memory_space<vmem>> -> memref<1x32xf32, #tpu.memory_space<vmem>>
    %125 = tpu.memref_slice %arg4[%c0_i32_79] : memref<1x!tpu.dma_semaphore, #tpu.memory_space<semaphore_mem>> -> memref<1x!tpu.dma_semaphore, #tpu.memory_space<semaphore_mem>>
    %126 = tpu.memref_squeeze %125 : memref<1x!tpu.dma_semaphore, #tpu.memory_space<semaphore_mem>> -> memref<!tpu.dma_semaphore, #tpu.memory_space<semaphore_mem>>
    tpu.enqueue_dma source(%123 : memref<1x32xf32, #tpu.memory_space<any>>) target(%124 : memref<1x32xf32, #tpu.memory_space<vmem>>) target_semaphore(%126 : memref<!tpu.dma_semaphore, #tpu.memory_space<semaphore_mem>>)
    %c14_i32 = arith.constant 14 : i32
    %127 = arith.addi %0, %c14_i32 : i32
    %128 = arith.index_cast %127 : i32 to index
    %129 = memref.load %arg1[%128] : memref<32xi32, #tpu.memory_space<smem>>
    %c0_i32_83 = arith.constant 0 : i32
    %130 = arith.maxsi %129, %c0_i32_83 : i32
    %c31_i32_84 = arith.constant 31 : i32
    %131 = arith.minsi %130, %c31_i32_84 : i32
    %c0_i32_85 = arith.constant 0 : i32
    %c0_i32_86 = arith.constant 0 : i32
    %132 = tpu.memref_slice %arg2[%131, %c0_i32_86] : memref<32x32xf32, #tpu.memory_space<any>> -> memref<1x32xf32, #tpu.memory_space<any>>
    %c14_i32_87 = arith.constant 14 : i32
    %c0_i32_88 = arith.constant 0 : i32
    %133 = tpu.memref_slice %arg3[%c14_i32_87, %c0_i32_88] : memref<16x32xf32, #tpu.memory_space<vmem>> -> memref<1x32xf32, #tpu.memory_space<vmem>>
    %134 = tpu.memref_slice %arg4[%c0_i32_85] : memref<1x!tpu.dma_semaphore, #tpu.memory_space<semaphore_mem>> -> memref<1x!tpu.dma_semaphore, #tpu.memory_space<semaphore_mem>>
    %135 = tpu.memref_squeeze %134 : memref<1x!tpu.dma_semaphore, #tpu.memory_space<semaphore_mem>> -> memref<!tpu.dma_semaphore, #tpu.memory_space<semaphore_mem>>
    tpu.enqueue_dma source(%132 : memref<1x32xf32, #tpu.memory_space<any>>) target(%133 : memref<1x32xf32, #tpu.memory_space<vmem>>) target_semaphore(%135 : memref<!tpu.dma_semaphore, #tpu.memory_space<semaphore_mem>>)
    %c15_i32 = arith.constant 15 : i32
    %136 = arith.addi %0, %c15_i32 : i32
    %137 = arith.index_cast %136 : i32 to index
    %138 = memref.load %arg1[%137] : memref<32xi32, #tpu.memory_space<smem>>
    %c0_i32_89 = arith.constant 0 : i32
    %139 = arith.maxsi %138, %c0_i32_89 : i32
    %c31_i32_90 = arith.constant 31 : i32
    %140 = arith.minsi %139, %c31_i32_90 : i32
    %c0_i32_91 = arith.constant 0 : i32
    %c0_i32_92 = arith.constant 0 : i32
    %141 = tpu.memref_slice %arg2[%140, %c0_i32_92] : memref<32x32xf32, #tpu.memory_space<any>> -> memref<1x32xf32, #tpu.memory_space<any>>
    %c15_i32_93 = arith.constant 15 : i32
    %c0_i32_94 = arith.constant 0 : i32
    %142 = tpu.memref_slice %arg3[%c15_i32_93, %c0_i32_94] : memref<16x32xf32, #tpu.memory_space<vmem>> -> memref<1x32xf32, #tpu.memory_space<vmem>>
    %143 = tpu.memref_slice %arg4[%c0_i32_91] : memref<1x!tpu.dma_semaphore, #tpu.memory_space<semaphore_mem>> -> memref<1x!tpu.dma_semaphore, #tpu.memory_space<semaphore_mem>>
    %144 = tpu.memref_squeeze %143 : memref<1x!tpu.dma_semaphore, #tpu.memory_space<semaphore_mem>> -> memref<!tpu.dma_semaphore, #tpu.memory_space<semaphore_mem>>
    tpu.enqueue_dma source(%141 : memref<1x32xf32, #tpu.memory_space<any>>) target(%142 : memref<1x32xf32, #tpu.memory_space<vmem>>) target_semaphore(%144 : memref<!tpu.dma_semaphore, #tpu.memory_space<semaphore_mem>>)
    %c0_i32_95 = arith.constant 0 : i32
    %145 = tpu.memref_slice %arg4[%c0_i32_95] : memref<1x!tpu.dma_semaphore, #tpu.memory_space<semaphore_mem>> -> memref<1x!tpu.dma_semaphore, #tpu.memory_space<semaphore_mem>>
    %146 = tpu.memref_squeeze %145 : memref<1x!tpu.dma_semaphore, #tpu.memory_space<semaphore_mem>> -> memref<!tpu.dma_semaphore, #tpu.memory_space<semaphore_mem>>
    tpu.wait_dma2 semaphore(%146 : memref<!tpu.dma_semaphore, #tpu.memory_space<semaphore_mem>>) src(%arg3 : memref<16x32xf32, #tpu.memory_space<vmem>>) dst(%arg3 : memref<16x32xf32, #tpu.memory_space<vmem>>)
    return
  }
  func.func @transform_1(%arg0: i32, %arg1: memref<32xi32, #tpu.memory_space<smem>>) -> (i32, i32) {
    %c0_i32 = arith.constant 0 : i32
    %c0_i32_0 = arith.constant 0 : i32
    return %arg0, %c0_i32 : i32, i32
  }
}

</mosaic_0001>

<bundles_post_ra>
// kernel: tpu_custom_call.1
= control target key start
LH: loop header
LB: loop body
LE: loop exit
PB: predicated region body
PF: predicated region fallthrough
CT: control target
= control target key end

     0   :  { %s1580_s0 = inlined_call_operand.hbm [shape: s32[32], index: 0, kind: input, shape index: {}]   ;;  %s1581_s1 = inlined_call_operand.hbm [shape: f32[32,32], index: 1, kind: input, shape index: {}]   ;;  %s1582_s2 = inlined_call_operand.hbm [shape: f32[32,32], index: 2, kind: output, shape index: {}]  }
   0x1   :  { %s647_s11 = scalar_lea.hbm %s1580_s0, 16 }
   0x2   :  { %p648_p0 = scmp.ne.s32.totalorder %s1580_s0, %s647_s11  ;;  %p651_p1 = scmp.lt.u32.totalorder %s647_s11, %s1580_s0 }
   0x4   :  { %p653_p2 = pnand %p651_p1, %p648_p0 }
   0x6   :  { %656 = shalt.err (!%p653_p2)  }
   0x7   :  { %s1101_s16 = smov [#allocation4]  }
   0x8   :  { %8 = dma.hbm_to_smem %s1580_s0, 16, %s1101_s16, [#allocation3] }
   0x9   :  { %1081 = dma.done.wait [#allocation3], 16 }
   0xa   :  { %1082 = vsyncadd [#allocation3], 4294967280 }
   0xb   :  { %10 = sfence }
   0xc   :  { %11 = vsyncpa [#allocation6], 0 }
   0xd   :  { %13 = vsyncpa [#allocation6 + $0x1], 0  ;;  %s1132_s19 = smov 0   ;;  %s1134_s20 = smov 0  }
   0xe   :  { %s1136_s21 = smov 0  }
   0xf LB: > { %s473_s0 = sadd.s32 4294967295, %s1099_s21   ;;  %s1149_s22 = sadd.s32 1, %s1099_s21   ;;  %s1099_s21 = sphi %s1136_s21, %s1606_s21   ;;  %s1095_s20 = sphi %s1134_s20, %s1605_s20   ;;  %s1091_s19 = sphi %s1132_s19, %s1604_s19  }
  0x10   : > { %s22_s23 = ssub.s32 %s1099_s21, %s1149_s22  ;;  %s25_s24 = sadd.s32 1, %s1095_s20 }
  0x11   : > { %p23_p3 = scmp.eq.s32.totalorder %s22_s23, 0  ;;  %p474_p4 = scmp.ne.s32.totalorder %s22_s23, 0 }
  0x12   : > { %p29_p5 = scmp.eq.s32.totalorder %s1099_s21, 1  ;;  %p34_p6 = scmp.ne.s32.totalorder %s1095_s20, %s1091_s19 }
  0x13   : > { %s1158_s25 = scalar_select %p23_p3, %s1095_s20, %s25_s24  }
  0x14   : > { %p1160_p7 = por %p474_p4, %p29_p5  ;;  %p35_p8 = scmp.eq.s32.totalorder %s473_s0, 1 }
  0x15   : > { %1586 = sst [smem:[#allocation44_spill]] %s1158_s25  ;;  %p475_p10 = scmp.ge.s32.totalorder %s1099_s21, 2 }
  0x16   : > { %s1587_s26 = scalar_select %p1160_p7, 1, 0 }
  0x17   : > { %p1164_p9 = por %p35_p8, %p34_p6  ;;  %44 = sbr.rel (%p475_p10) target bundleno = 461 (0x1cd), region = 12 }
  0x18   : > { %s1583_s28 = sand.u32 (!%p475_p10), 1, %s1095_s20   ;;  %s1171_s29 = sshll.u32 (!%p475_p10), %s1099_s21, 4 }
  0x19   : > { %s1588_s27 = scalar_select %p1164_p9, 1, 0 }
  0x1a   : > { %s476_s30 = sshll.u32 (!%p475_p10), %s1583_s28, 4  ;;  %s54_s3 = sld [smem:[#allocation4 + %s1171_s29]] (!%p475_p10) }
  0x1b   : > { %s72_s4 = sadd.s32 (!%p475_p10), 1, %s1171_s29  ;;  %s1177_s5 = scalar_lea.vmem (!%p475_p10), [#allocation5], %s476_s30 }
  0x1c   : > { %s68_s6 = sshll.u32 (!%p475_p10), %s1177_s5, 4  ;;  %s1180_s7 = sld [smem:[#allocation4 + %s72_s4]] (!%p475_p10)  ;;  %s1182_s6 = int_to_ptr.vmem [resolvable:$true] %s68_s6 }
  0x1d   : > { %s80_s8 = scalar_lea.vmem (!%p475_p10), %s1177_s5, 1 [#allocation5]  ;;  %s92_s10 = sadd.s32 (!%p475_p10), 2, %s1171_s29 }
  0x1e   : > { %s88_s9 = sshll.u32 %s80_s8, 4  ;;  %s1188_s11 = sld [smem:[#allocation4 + %s92_s10]]  ;;  %s1186_s9 = int_to_ptr.vmem [resolvable:$true] %s88_s9 }
  0x1f   : > { %s100_s12 = scalar_lea.vmem %s1177_s5, 2 [#allocation5]  ;;  %s112_s13 = sadd.s32 3, %s1171_s29 }
  0x20   : > { %p55_p11 = scmp.gt.s32.totalorder %s54_s3, 0  ;;  %p478_p12 = scmp.lt.s32.totalorder %s54_s3, 31 }
  0x21   : > { %s1203_s30 = scalar_lea.hbm %s1581_s1, 512 }
  0x22   : > { %s1608_s3 = smov (!%p55_p11, %s54_s3), 0  ;;  %p74_p13 = scmp.gt.s32.totalorder %s1180_s7, 0 }
  0x23   : > { %p484_p0 = scmp.lt.s32.totalorder %s1180_s7, 31  ;;  %s1610_s3 = smov (!%p478_p12, %s1608_s3), 31 }
  0x24   : > { %s75_s14 = scalar_select %p74_p13, %s1180_s7, 0 }
  0x25   : > { %s483_s15 = sshll.u32 %s1610_s3, 4  ;;  %p94_p1 = scmp.gt.s32.totalorder %s1188_s11, 0 }
  0x26   : > { %s60_s18 = scalar_lea.hbm %s1581_s1, %s483_s15 }
  0x27   : > { %s657_s0 = scalar_lea.hbm %s60_s18, 16  ;;  %p660_p4 = scmp.lt.u32.totalorder %s60_s18, %s1581_s1 }
  0x28   : > { %p658_p3 = scmp.ne.s32.totalorder %s60_s18, %s657_s0  ;;  %p661_p5 = scmp.lt.u32.totalorder %s1203_s30, %s657_s0 }
  0x29   : > { %p663_p8 = scmp.lt.u32.totalorder %s657_s0, %s60_s18 }
  0x2a   : > { %p662_p6 = por %p661_p5, %p660_p4 }
  0x2c   : > { %p664_p10 = por %p663_p8, %p662_p6 }
  0x2e   : > { %p665_p11 = pnand %p664_p10, %p658_p3 }
  0x30   : > { %668 = shalt.err (!%p665_p11)  }
  0x31   : > { %s669_s3 = scalar_lea.vmem %s1182_s6, 16  ;;  %s1102_s10 = smov [#allocation5]  }
  0x32   : > { %p670_p12 = scmp.ne.s32.totalorder %s1182_s6, %s669_s3  ;;  %s671_s15 = sshll.u32 %s1102_s10, 4  ;;  %s1211_s15 = int_to_ptr.vmem [resolvable:$false] %s671_s15 }
  0x33   : > { %s1214_s16 = scalar_lea.vmem %s1211_s15, 512  ;;  %p1584_p13 = scmp.lt.s32.totalorder %s1182_s6, %s1211_s15 }
  0x34   : > { %p675_p4 = scmp.lt.s32.totalorder %s1214_s16, %s669_s3 }
  0x36   : > { %p676_p3 = por %p675_p4, %p1584_p13 }
  0x38   : > { %p677_p5 = pnand %p676_p3, %p670_p12 }
  0x3a   : > { %680 = shalt.err (!%p677_p5)  }
  0x3b   : > { %71 = dma.hbm_to_vmem [thread:$0]  %s60_s18, 16, %s1182_s6, [#allocation2] }
  0x3c   : > { %s1612_s14 = smov (!%p484_p0, %s75_s14), 31  ;;  %s108_s23 = sshll.u32 %s100_s12, 4  ;;  %s1233_s23 = int_to_ptr.vmem [resolvable:$true] %s108_s23 }
  0x3d   : > { %s95_s17 = scalar_select %p94_p1, %s1188_s11, 0 }
  0x3e   : > { %s489_s0 = sshll.u32 %s1612_s14, 4 }
  0x3f   : > { %s79_s8 = scalar_lea.hbm %s1581_s1, %s489_s0 }
  0x40   : > { %s681_s3 = scalar_lea.hbm %s79_s8, 16  ;;  %p684_p8 = scmp.lt.u32.totalorder %s79_s8, %s1581_s1 }
  0x41   : > { %p682_p6 = scmp.ne.s32.totalorder %s79_s8, %s681_s3  ;;  %p685_p10 = scmp.lt.u32.totalorder %s1203_s30, %s681_s3 }
  0x42   : > { %p687_p0 = scmp.lt.u32.totalorder %s681_s3, %s79_s8 }
  0x43   : > { %p686_p11 = por %p685_p10, %p684_p8 }
  0x45   : > { %p688_p12 = por %p687_p0, %p686_p11 }
  0x47   : > { %p689_p1 = pnand %p688_p12, %p682_p6 }
  0x49   : > { %692 = shalt.err (!%p689_p1)  }
  0x4a   : > { %s693_s7 = scalar_lea.vmem %s1186_s9, 16  ;;  %p698_p3 = scmp.lt.s32.totalorder %s1186_s9, %s1211_s15 }
  0x4b   : > { %p694_p4 = scmp.ne.s32.totalorder %s1186_s9, %s693_s7  ;;  %p699_p5 = scmp.lt.s32.totalorder %s1214_s16, %s693_s7 }
  0x4d   : > { %p700_p13 = por %p699_p5, %p698_p3 }
  0x4f   : > { %p701_p2 = pnand %p700_p13, %p694_p4 }
  0x51   : > { %704 = shalt.err (!%p701_p2)  }
  0x52   : > { %91 = dma.hbm_to_vmem [thread:$0]  %s79_s8, 16, %s1186_s9, [#allocation2] }
  0x53   : > { %p1589_p6 = scmp.lt.s32.totalorder %s1188_s11, 31  ;;  %s1249_s28 = sld [smem:[#allocation4 + %s112_s13]] }
  0x54   : > { %s120_s12 = scalar_lea.vmem %s1177_s5, 3 [#allocation5] }
  0x55   : > { %s1614_s17 = smov (!%p1589_p6, %s95_s17), 31  ;;  %s128_s18 = sshll.u32 %s120_s12, 4  ;;  %s1255_s18 = int_to_ptr.vmem [resolvable:$true] %s128_s18 }
  0x56   : > { %s495_s14 = sshll.u32 %s1614_s17, 4 }
  0x57   : > { %s99_s4 = scalar_lea.hbm %s1581_s1, %s495_s14 }
  0x58   : > { %s705_s3 = scalar_lea.hbm %s99_s4, 16  ;;  %p708_p13 = scmp.lt.u32.totalorder %s99_s4, %s1581_s1 }
  0x59   : > { %p706_p2 = scmp.ne.s32.totalorder %s99_s4, %s705_s3  ;;  %p709_p8 = scmp.lt.u32.totalorder %s1203_s30, %s705_s3 }
  0x5a   : > { %p711_p11 = scmp.lt.u32.totalorder %s705_s3, %s99_s4 }
  0x5b   : > { %p710_p10 = por %p709_p8, %p708_p13 }
  0x5d   : > { %p712_p0 = por %p711_p11, %p710_p10 }
  0x5f   : > { %p713_p12 = pnand %p712_p0, %p706_p2 }
  0x61   : > { %716 = shalt.err (!%p713_p12)  }
  0x62   : > { %s717_s9 = scalar_lea.vmem %s1233_s23, 16  ;;  %p722_p4 = scmp.lt.s32.totalorder %s1233_s23, %s1211_s15 }
  0x63   : > { %p718_p1 = scmp.ne.s32.totalorder %s1233_s23, %s717_s9  ;;  %p723_p3 = scmp.lt.s32.totalorder %s1214_s16, %s717_s9 }
  0x65   : > { %p724_p5 = por %p723_p3, %p722_p4 }
  0x67   : > { %p725_p6 = pnand %p724_p5, %p718_p1 }
  0x69   : > { %728 = shalt.err (!%p725_p6)  }
  0x6a   : > { %111 = dma.hbm_to_vmem [thread:$0]  %s99_s4, 16, %s1233_s23, [#allocation2] }
  0x6b   : > { %s132_s11 = sadd.s32 4, %s1171_s29  ;;  %s140_s13 = scalar_lea.vmem %s1177_s5, 4 [#allocation5] }
  0x6c   : > { %s1269_s17 = sld [smem:[#allocation4 + %s132_s11]]  ;;  %s148_s8 = sshll.u32 %s140_s13, 4  ;;  %s1273_s8 = int_to_ptr.vmem [resolvable:$true] %s148_s8 }
  0x6d   : > { %p114_p2 = scmp.gt.s32.totalorder %s1249_s28, 0  ;;  %p496_p13 = scmp.lt.s32.totalorder %s1249_s28, 31 }
  0x6e   : > { %s152_s12 = sadd.s32 5, %s1171_s29  ;;  %s160_s0 = scalar_lea.vmem %s1177_s5, 5 [#allocation5] }
  0x6f   : > { %s1616_s28 = smov (!%p114_p2, %s1249_s28), 0  ;;  %s1277_s14 = sld [smem:[#allocation4 + %s152_s12]] }
  0x70   : > { %s1618_s28 = smov (!%p496_p13, %s1616_s28), 31  ;;  %s168_s24 = sshll.u32 %s160_s0, 4  ;;  %s1285_s24 = int_to_ptr.vmem [resolvable:$true] %s168_s24 }
  0x71   : > { %s501_s23 = sshll.u32 %s1618_s28, 4 }
  0x72   : > { %s119_s10 = scalar_lea.hbm %s1581_s1, %s501_s23 }
  0x73   : > { %s729_s7 = scalar_lea.hbm %s119_s10, 16  ;;  %p732_p0 = scmp.lt.u32.totalorder %s119_s10, %s1581_s1 }
  0x74   : > { %p730_p11 = scmp.ne.s32.totalorder %s119_s10, %s729_s7  ;;  %p733_p12 = scmp.lt.u32.totalorder %s1203_s30, %s729_s7 }
  0x75   : > { %p735_p4 = scmp.lt.u32.totalorder %s729_s7, %s119_s10 }
  0x76   : > { %p734_p1 = por %p733_p12, %p732_p0 }
  0x78   : > { %p736_p3 = por %p735_p4, %p734_p1 }
  0x7a   : > { %p737_p5 = pnand %p736_p3, %p730_p11 }
  0x7c   : > { %740 = shalt.err (!%p737_p5)  }
  0x7d   : > { %s741_s28 = scalar_lea.vmem %s1255_s18, 16  ;;  %p746_p2 = scmp.lt.s32.totalorder %s1255_s18, %s1211_s15 }
  0x7e   : > { %p742_p6 = scmp.ne.s32.totalorder %s1255_s18, %s741_s28  ;;  %p747_p13 = scmp.lt.s32.totalorder %s1214_s16, %s741_s28 }
  0x80   : > { %p748_p10 = por %p747_p13, %p746_p2 }
  0x82   : > { %p749_p8 = pnand %p748_p10, %p742_p6 }
  0x84   : > { %752 = shalt.err (!%p749_p8)  }
  0x85   : > { %131 = dma.hbm_to_vmem [thread:$0]  %s119_s10, 16, %s1255_s18, [#allocation2] }
  0x86   : > { %p1590_p11 = scmp.gt.s32.totalorder %s1269_s17, 0  ;;  %p154_p0 = scmp.gt.s32.totalorder %s1277_s14, 0 }
  0x87   : > { %p1591_p1 = scmp.lt.s32.totalorder %s1269_s17, 31  ;;  %s172_s23 = sadd.s32 6, %s1171_s29 }
  0x88   : > { %s135_s13 = scalar_select %p1590_p11, %s1269_s17, 0 }
  0x89   : > { %s155_s12 = scalar_select %p154_p0, %s1277_s14, 0 }
  0x8a   : > { %s1620_s13 = smov (!%p1591_p1, %s135_s13), 31  ;;  %s1309_s9 = sld [smem:[#allocation4 + %s172_s23]] }
  0x8b   : > { %s507_s0 = sshll.u32 %s1620_s13, 4 }
  0x8c   : > { %s139_s7 = scalar_lea.hbm %s1581_s1, %s507_s0 }
  0x8d   : > { %s753_s11 = scalar_lea.hbm %s139_s7, 16  ;;  %p756_p10 = scmp.lt.u32.totalorder %s139_s7, %s1581_s1 }
  0x8e   : > { %p754_p8 = scmp.ne.s32.totalorder %s139_s7, %s753_s11  ;;  %p757_p4 = scmp.lt.u32.totalorder %s1203_s30, %s753_s11 }
  0x8f   : > { %p759_p5 = scmp.lt.u32.totalorder %s753_s11, %s139_s7 }
  0x90   : > { %p758_p3 = por %p757_p4, %p756_p10 }
  0x92   : > { %p760_p6 = por %p759_p5, %p758_p3 }
  0x94   : > { %p761_p2 = pnand %p760_p6, %p754_p8 }
  0x96   : > { %764 = shalt.err (!%p761_p2)  }
  0x97   : > { %s765_s18 = scalar_lea.vmem %s1273_s8, 16  ;;  %p770_p11 = scmp.lt.s32.totalorder %s1273_s8, %s1211_s15 }
  0x98   : > { %p766_p13 = scmp.ne.s32.totalorder %s1273_s8, %s765_s18  ;;  %p771_p0 = scmp.lt.s32.totalorder %s1214_s16, %s765_s18 }
  0x9a   : > { %p772_p1 = por %p771_p0, %p770_p11 }
  0x9c   : > { %p773_p12 = pnand %p772_p1, %p766_p13 }
  0x9e   : > { %776 = shalt.err (!%p773_p12)  }
  0x9f   : > { %151 = dma.hbm_to_vmem [thread:$0]  %s139_s7, 16, %s1273_s8, [#allocation2] }
  0xa0   : > { %p1592_p8 = scmp.lt.s32.totalorder %s1277_s14, 31  ;;  %s180_s25 = scalar_lea.vmem %s1177_s5, 6 [#allocation5] }
  0xa1   : > { %s192_s17 = sadd.s32 7, %s1171_s29  ;;  %s188_s13 = sshll.u32 %s180_s25, 4  ;;  %s1328_s13 = int_to_ptr.vmem [resolvable:$true] %s188_s13 }
  0xa2   : > { %s1622_s12 = smov (!%p1592_p8, %s155_s12), 31 }
  0xa3   : > { %s513_s10 = sshll.u32 %s1622_s12, 4 }
  0xa4   : > { %s159_s4 = scalar_lea.hbm %s1581_s1, %s513_s10 }
  0xa5   : > { %s777_s3 = scalar_lea.hbm %s159_s4, 16  ;;  %p780_p10 = scmp.lt.u32.totalorder %s159_s4, %s1581_s1 }
  0xa6   : > { %p778_p12 = scmp.ne.s32.totalorder %s159_s4, %s777_s3  ;;  %p781_p4 = scmp.lt.u32.totalorder %s1203_s30, %s777_s3 }
  0xa7   : > { %p783_p5 = scmp.lt.u32.totalorder %s777_s3, %s159_s4 }
  0xa8   : > { %p782_p3 = por %p781_p4, %p780_p10 }
  0xaa   : > { %p784_p6 = por %p783_p5, %p782_p3 }
  0xac   : > { %p785_p2 = pnand %p784_p6, %p778_p12 }
  0xae   : > { %788 = shalt.err (!%p785_p2)  }
  0xaf   : > { %s789_s8 = scalar_lea.vmem %s1285_s24, 16  ;;  %p794_p11 = scmp.lt.s32.totalorder %s1285_s24, %s1211_s15 }
  0xb0   : > { %p790_p13 = scmp.ne.s32.totalorder %s1285_s24, %s789_s8  ;;  %p795_p0 = scmp.lt.s32.totalorder %s1214_s16, %s789_s8 }
  0xb2   : > { %p796_p1 = por %p795_p0, %p794_p11 }
  0xb4   : > { %p797_p8 = pnand %p796_p1, %p790_p13 }
  0xb6   : > { %800 = shalt.err (!%p797_p8)  }
  0xb7   : > { %171 = dma.hbm_to_vmem [thread:$0]  %s159_s4, 16, %s1285_s24, [#allocation2] }
  0xb8   : > { %p174_p12 = scmp.gt.s32.totalorder %s1309_s9, 0  ;;  %p514_p10 = scmp.lt.s32.totalorder %s1309_s9, 31 }
  0xb9   : > { %s1342_s14 = sld [smem:[#allocation4 + %s192_s17]]  ;;  %s200_s12 = scalar_lea.vmem %s1177_s5, 7 [#allocation5] }
  0xba   : > { %s1624_s9 = smov (!%p174_p12, %s1309_s9), 0  ;;  %s208_s7 = sshll.u32 %s200_s12, 4  ;;  %s1347_s7 = int_to_ptr.vmem [resolvable:$true] %s208_s7 }
  0xbb   : > { %s212_s18 = sadd.s32 8, %s1171_s29  ;;  %s1626_s9 = smov (!%p514_p10, %s1624_s9), 31 }
  0xbc   : > { %s1349_s25 = sld [smem:[#allocation4 + %s212_s18]]  ;;  %s519_s10 = sshll.u32 %s1626_s9, 4 }
  0xbd   : > { %s220_s0 = scalar_lea.vmem %s1177_s5, 8 [#allocation5]  ;;  %s179_s24 = scalar_lea.hbm %s1581_s1, %s519_s10 }
  0xbe   : > { %s801_s4 = scalar_lea.hbm %s179_s24, 16  ;;  %p804_p5 = scmp.lt.u32.totalorder %s179_s24, %s1581_s1 }
  0xbf   : > { %p802_p3 = scmp.ne.s32.totalorder %s179_s24, %s801_s4  ;;  %p805_p6 = scmp.lt.u32.totalorder %s1203_s30, %s801_s4 }
  0xc0   : > { %p807_p13 = scmp.lt.u32.totalorder %s801_s4, %s179_s24 }
  0xc1   : > { %p806_p2 = por %p805_p6, %p804_p5 }
  0xc3   : > { %p808_p11 = por %p807_p13, %p806_p2 }
  0xc5   : > { %p809_p0 = pnand %p808_p11, %p802_p3 }
  0xc7   : > { %812 = shalt.err (!%p809_p0)  }
  0xc8   : > { %s813_s9 = scalar_lea.vmem %s1328_s13, 16  ;;  %p818_p8 = scmp.lt.s32.totalorder %s1328_s13, %s1211_s15 }
  0xc9   : > { %p814_p1 = scmp.ne.s32.totalorder %s1328_s13, %s813_s9  ;;  %p819_p12 = scmp.lt.s32.totalorder %s1214_s16, %s813_s9 }
  0xcb   : > { %p820_p10 = por %p819_p12, %p818_p8 }
  0xcd   : > { %p821_p4 = pnand %p820_p10, %p814_p1 }
  0xcf   : > { %824 = shalt.err (!%p821_p4)  }
  0xd0   : > { %191 = dma.hbm_to_vmem [thread:$0]  %s179_s24, 16, %s1328_s13, [#allocation2] }
  0xd1   : > { %p1593_p3 = scmp.gt.s32.totalorder %s1342_s14, 0  ;;  %p520_p5 = scmp.lt.s32.totalorder %s1342_s14, 31 }
  0xd2   : > { %s228_s8 = sshll.u32 %s220_s0, 4  ;;  %p214_p6 = scmp.gt.s32.totalorder %s1349_s25, 0  ;;  %s1373_s8 = int_to_ptr.vmem [resolvable:$true] %s228_s8 }
  0xd3   : > { %s195_s28 = scalar_select %p1593_p3, %s1342_s14, 0 }
  0xd4   : > { %s215_s12 = scalar_select %p214_p6, %s1349_s25, 0 }
  0xd5   : > { %s1628_s28 = smov (!%p520_p5, %s195_s28), 31  ;;  %s232_s4 = sadd.s32 9, %s1171_s29 }
  0xd6   : > { %s525_s18 = sshll.u32 %s1628_s28, 4 }
  0xd7   : > { %s199_s3 = scalar_lea.hbm %s1581_s1, %s525_s18 }
  0xd8   : > { %s825_s17 = scalar_lea.hbm %s199_s3, 16  ;;  %p828_p13 = scmp.lt.u32.totalorder %s199_s3, %s1581_s1 }
  0xd9   : > { %p826_p4 = scmp.ne.s32.totalorder %s199_s3, %s825_s17  ;;  %p829_p11 = scmp.lt.u32.totalorder %s1203_s30, %s825_s17 }
  0xda   : > { %p831_p1 = scmp.lt.u32.totalorder %s825_s17, %s199_s3 }
  0xdb   : > { %p830_p0 = por %p829_p11, %p828_p13 }
  0xdd   : > { %p832_p8 = por %p831_p1, %p830_p0 }
  0xdf   : > { %p833_p12 = pnand %p832_p8, %p826_p4 }
  0xe1   : > { %836 = shalt.err (!%p833_p12)  }
  0xe2   : > { %s837_s14 = scalar_lea.vmem %s1347_s7, 16  ;;  %p842_p3 = scmp.lt.s32.totalorder %s1347_s7, %s1211_s15 }
  0xe3   : > { %p838_p10 = scmp.ne.s32.totalorder %s1347_s7, %s837_s14  ;;  %p843_p5 = scmp.lt.s32.totalorder %s1214_s16, %s837_s14 }
  0xe5   : > { %p844_p6 = por %p843_p5, %p842_p3 }
  0xe7   : > { %p845_p2 = pnand %p844_p6, %p838_p10 }
  0xe9   : > { %848 = shalt.err (!%p845_p2)  }
  0xea   : > { %211 = dma.hbm_to_vmem [thread:$0]  %s199_s3, 16, %s1347_s7, [#allocation2] }
  0xeb   : > { %p1594_p13 = scmp.lt.s32.totalorder %s1349_s25, 31  ;;  %s1391_s0 = sld [smem:[#allocation4 + %s232_s4]] }
  0xec   : > { %s240_s24 = scalar_lea.vmem %s1177_s5, 9 [#allocation5] }
  0xed   : > { %s1630_s12 = smov (!%p1594_p13, %s215_s12), 31  ;;  %s248_s23 = sshll.u32 %s240_s24, 4  ;;  %s1409_s23 = int_to_ptr.vmem [resolvable:$true] %s248_s23 }
  0xee   : > { %s531_s9 = sshll.u32 %s1630_s12, 4 }
  0xef   : > { %s219_s10 = scalar_lea.hbm %s1581_s1, %s531_s9 }
  0xf0   : > { %s849_s17 = scalar_lea.hbm %s219_s10, 16  ;;  %p852_p2 = scmp.lt.u32.totalorder %s219_s10, %s1581_s1 }
  0xf1   : > { %p850_p4 = scmp.ne.s32.totalorder %s219_s10, %s849_s17  ;;  %p853_p11 = scmp.lt.u32.totalorder %s1203_s30, %s849_s17 }
  0xf2   : > { %p855_p1 = scmp.lt.u32.totalorder %s849_s17, %s219_s10 }
  0xf3   : > { %p854_p0 = por %p853_p11, %p852_p2 }
  0xf5   : > { %p856_p8 = por %p855_p1, %p854_p0 }
  0xf7   : > { %p857_p12 = pnand %p856_p8, %p850_p4 }
  0xf9   : > { %860 = shalt.err (!%p857_p12)  }
  0xfa   : > { %s861_s7 = scalar_lea.vmem %s1373_s8, 16  ;;  %p866_p3 = scmp.lt.s32.totalorder %s1373_s8, %s1211_s15 }
  0xfb   : > { %p862_p10 = scmp.ne.s32.totalorder %s1373_s8, %s861_s7  ;;  %p867_p5 = scmp.lt.s32.totalorder %s1214_s16, %s861_s7 }
  0xfd   : > { %p868_p6 = por %p867_p5, %p866_p3 }
  0xff   : > { %p869_p13 = pnand %p868_p6, %p862_p10 }
 0x101   : > { %872 = shalt.err (!%p869_p13)  }
 0x102   : > { %231 = dma.hbm_to_vmem [thread:$0]  %s219_s10, 16, %s1373_s8, [#allocation2] }
 0x103   : > { %s252_s25 = sadd.s32 10, %s1171_s29  ;;  %s260_s12 = scalar_lea.vmem %s1177_s5, 10 [#allocation5] }
 0x104   : > { %s1411_s3 = sld [smem:[#allocation4 + %s252_s25]]  ;;  %p234_p4 = scmp.gt.s32.totalorder %s1391_s0, 0 }
 0x105   : > { %p532_p2 = scmp.lt.s32.totalorder %s1391_s0, 31  ;;  %s268_s4 = sshll.u32 %s260_s12, 4  ;;  %s1421_s4 = int_to_ptr.vmem [resolvable:$true] %s268_s4 }
 0x106   : > { %s272_s14 = sadd.s32 11, %s1171_s29  ;;  %s1632_s0 = smov (!%p234_p4, %s1391_s0), 0 }
 0x107   : > { %s1417_s24 = sld [smem:[#allocation4 + %s272_s14]]  ;;  %s280_s9 = scalar_lea.vmem %s1177_s5, 11 [#allocation5] }
 0x108   : > { %s1634_s0 = smov (!%p532_p2, %s1632_s0), 31  ;;  %s1427_s17 = sshll.u32 %s280_s9, 4  ;;  %s289_s17 = int_to_ptr.vmem [resolvable:$true] %s1427_s17 }
 0x109   : > { %s537_s8 = sshll.u32 %s1634_s0, 4 }
 0x10a   : > { %s239_s10 = scalar_lea.hbm %s1581_s1, %s537_s8 }
 0x10b   : > { %s873_s11 = scalar_lea.hbm %s239_s10, 16  ;;  %p876_p8 = scmp.lt.u32.totalorder %s239_s10, %s1581_s1 }
 0x10c   : > { %p874_p1 = scmp.ne.s32.totalorder %s239_s10, %s873_s11  ;;  %p877_p12 = scmp.lt.u32.totalorder %s1203_s30, %s873_s11 }
 0x10d   : > { %p879_p3 = scmp.lt.u32.totalorder %s873_s11, %s239_s10 }
 0x10e   : > { %p878_p10 = por %p877_p12, %p876_p8 }
 0x110   : > { %p880_p5 = por %p879_p3, %p878_p10 }
 0x112   : > { %p881_p6 = pnand %p880_p5, %p874_p1 }
 0x114   : > { %884 = shalt.err (!%p881_p6)  }
 0x115   : > { %s885_s0 = scalar_lea.vmem %s1409_s23, 16  ;;  %p890_p4 = scmp.lt.s32.totalorder %s1409_s23, %s1211_s15 }
 0x116   : > { %p886_p13 = scmp.ne.s32.totalorder %s1409_s23, %s885_s0  ;;  %p891_p2 = scmp.lt.s32.totalorder %s1214_s16, %s885_s0 }
 0x118   : > { %p892_p0 = por %p891_p2, %p890_p4 }
 0x11a   : > { %p893_p11 = pnand %p892_p0, %p886_p13 }
 0x11c   : > { %896 = shalt.err (!%p893_p11)  }
 0x11d   : > { %251 = dma.hbm_to_vmem [thread:$0]  %s239_s10, 16, %s1409_s23, [#allocation2] }
 0x11e   : > { %p1595_p1 = scmp.gt.s32.totalorder %s1411_s3, 0  ;;  %p274_p8 = scmp.gt.s32.totalorder %s1417_s24, 0 }
 0x11f   : > { %p1596_p10 = scmp.lt.s32.totalorder %s1411_s3, 31  ;;  %s292_s9 = sadd.s32 12, %s1171_s29 }
 0x120   : > { %s255_s25 = scalar_select %p1595_p1, %s1411_s3, 0 }
 0x121   : > { %s275_s12 = scalar_select %p274_p8, %s1417_s24, 0 }
 0x122   : > { %s1636_s25 = smov (!%p1596_p10, %s255_s25), 31  ;;  %s1451_s11 = sld [smem:[#allocation4 + %s292_s9]] }
 0x123   : > { %s543_s14 = sshll.u32 %s1636_s25, 4 }
 0x124   : > { %s259_s18 = scalar_lea.hbm %s1581_s1, %s543_s14 }
 0x125   : > { %s897_s13 = scalar_lea.hbm %s259_s18, 16  ;;  %p900_p0 = scmp.lt.u32.totalorder %s259_s18, %s1581_s1 }
 0x126   : > { %p898_p11 = scmp.ne.s32.totalorder %s259_s18, %s897_s13  ;;  %p901_p3 = scmp.lt.u32.totalorder %s1203_s30, %s897_s13 }
 0x127   : > { %p903_p6 = scmp.lt.u32.totalorder %s897_s13, %s259_s18 }
 0x128   : > { %p902_p5 = por %p901_p3, %p900_p0 }
 0x12a   : > { %p904_p13 = por %p903_p6, %p902_p5 }
 0x12c   : > { %p905_p4 = pnand %p904_p13, %p898_p11 }
 0x12e   : > { %908 = shalt.err (!%p905_p4)  }
 0x12f   : > { %s909_s23 = scalar_lea.vmem %s1421_s4, 16  ;;  %p914_p1 = scmp.lt.s32.totalorder %s1421_s4, %s1211_s15 }
 0x130   : > { %p910_p2 = scmp.ne.s32.totalorder %s1421_s4, %s909_s23  ;;  %p915_p8 = scmp.lt.s32.totalorder %s1214_s16, %s909_s23 }
 0x132   : > { %p916_p10 = por %p915_p8, %p914_p1 }
 0x134   : > { %p917_p12 = pnand %p916_p10, %p910_p2 }
 0x136   : > { %920 = shalt.err (!%p917_p12)  }
 0x137   : > { %271 = dma.hbm_to_vmem [thread:$0]  %s259_s18, 16, %s1421_s4, [#allocation2] }
 0x138   : > { %p1597_p11 = scmp.lt.s32.totalorder %s1417_s24, 31  ;;  %s300_s3 = scalar_lea.vmem %s1177_s5, 12 [#allocation5] }
 0x139   : > { %s312_s25 = sadd.s32 13, %s1171_s29  ;;  %s308_s28 = sshll.u32 %s300_s3, 4  ;;  %s309_s28 = int_to_ptr.vmem [resolvable:$true] %s308_s28 }
 0x13a   : > { %s1638_s12 = smov (!%p1597_p11, %s275_s12), 31 }
 0x13b   : > { %s549_s10 = sshll.u32 %s1638_s12, 4 }
 0x13c   : > { %s279_s8 = scalar_lea.hbm %s1581_s1, %s549_s10 }
 0x13d   : > { %s921_s13 = scalar_lea.hbm %s279_s8, 16  ;;  %p924_p0 = scmp.lt.u32.totalorder %s279_s8, %s1581_s1 }
 0x13e   : > { %p922_p12 = scmp.ne.s32.totalorder %s279_s8, %s921_s13  ;;  %p925_p3 = scmp.lt.u32.totalorder %s1203_s30, %s921_s13 }
 0x13f   : > { %p927_p6 = scmp.lt.u32.totalorder %s921_s13, %s279_s8 }
 0x140   : > { %p926_p5 = por %p925_p3, %p924_p0 }
 0x142   : > { %p928_p13 = por %p927_p6, %p926_p5 }
 0x144   : > { %p929_p4 = pnand %p928_p13, %p922_p12 }
 0x146   : > { %932 = shalt.err (!%p929_p4)  }
 0x147   : > { %s933_s4 = scalar_lea.vmem %s289_s17, 16  ;;  %p938_p1 = scmp.lt.s32.totalorder %s289_s17, %s1211_s15 }
 0x148   : > { %p934_p2 = scmp.ne.s32.totalorder %s289_s17, %s933_s4  ;;  %p939_p8 = scmp.lt.s32.totalorder %s1214_s16, %s933_s4 }
 0x14a   : > { %p940_p10 = por %p939_p8, %p938_p1 }
 0x14c   : > { %p941_p11 = pnand %p940_p10, %p934_p2 }
 0x14e   : > { %944 = shalt.err (!%p941_p11)  }
 0x14f   : > { %291 = dma.hbm_to_vmem [thread:$0]  %s279_s8, 16, %s289_s17, [#allocation2] }
 0x150   : > { %p294_p0 = scmp.gt.s32.totalorder %s1451_s11, 0  ;;  %p550_p3 = scmp.lt.s32.totalorder %s1451_s11, 31 }
 0x151   : > { %s1479_s24 = sld [smem:[#allocation4 + %s312_s25]]  ;;  %s320_s12 = scalar_lea.vmem %s1177_s5, 13 [#allocation5] }
 0x152   : > { %s1640_s11 = smov (!%p294_p0, %s1451_s11), 0  ;;  %s328_s18 = sshll.u32 %s320_s12, 4  ;;  %s1486_s18 = int_to_ptr.vmem [resolvable:$true] %s328_s18 }
 0x153   : > { %s332_s23 = sadd.s32 14, %s1171_s29  ;;  %s1642_s11 = smov (!%p550_p3, %s1640_s11), 31 }
 0x154   : > { %s1484_s3 = sld [smem:[#allocation4 + %s332_s23]]  ;;  %s555_s17 = sshll.u32 %s1642_s11, 4 }
 0x155   : > { %s299_s9 = scalar_lea.hbm %s1581_s1, %s555_s17 }
 0x156   : > { %s945_s8 = scalar_lea.hbm %s299_s9, 16  ;;  %p948_p6 = scmp.lt.u32.totalorder %s299_s9, %s1581_s1 }
 0x157   : > { %p946_p5 = scmp.ne.s32.totalorder %s299_s9, %s945_s8  ;;  %p949_p13 = scmp.lt.u32.totalorder %s1203_s30, %s945_s8 }
 0x158   : > { %p951_p2 = scmp.lt.u32.totalorder %s945_s8, %s299_s9 }
 0x159   : > { %p950_p4 = por %p949_p13, %p948_p6 }
 0x15b   : > { %p952_p1 = por %p951_p2, %p950_p4 }
 0x15d   : > { %p953_p8 = pnand %p952_p1, %p946_p5 }
 0x15f   : > { %956 = shalt.err (!%p953_p8)  }
 0x160   : > { %s957_s11 = scalar_lea.vmem %s309_s28, 16  ;;  %p962_p11 = scmp.lt.s32.totalorder %s309_s28, %s1211_s15 }
 0x161   : > { %p958_p10 = scmp.ne.s32.totalorder %s309_s28, %s957_s11  ;;  %p963_p0 = scmp.lt.s32.totalorder %s1214_s16, %s957_s11 }
 0x163   : > { %p964_p3 = por %p963_p0, %p962_p11 }
 0x165   : > { %p965_p12 = pnand %p964_p3, %p958_p10 }
 0x167   : > { %968 = shalt.err (!%p965_p12)  }
 0x168   : > { %311 = dma.hbm_to_vmem [thread:$0]  %s299_s9, 16, %s309_s28, [#allocation2] }
 0x169   : > { %p1598_p9 = scmp.gt.s32.totalorder %s1479_s24, 0  ;;  %p556_p5 = scmp.lt.s32.totalorder %s1479_s24, 31 }
 0x16a   : > { %s340_s0 = scalar_lea.vmem %s1177_s5, 14 [#allocation5]  ;;  %p334_p6 = scmp.gt.s32.totalorder %s1484_s3, 0 }
 0x16b   : > { %s315_s7 = scalar_select %p1598_p9, %s1479_s24, 0 }
 0x16c   : > { %p562_p13 = scmp.lt.s32.totalorder %s1484_s3, 31  ;;  %s348_s23 = sshll.u32 %s340_s0, 4  ;;  %s349_s23 = int_to_ptr.vmem [resolvable:$true] %s348_s23 }
 0x16d   : > { %s1644_s7 = smov (!%p556_p5, %s315_s7), 31  ;;  %s352_s14 = sadd.s32 15, %s1171_s29 }
 0x16e   : > { %s335_s4 = scalar_select %p334_p6, %s1484_s3, 0 }
 0x16f   : > { %s561_s12 = sshll.u32 %s1644_s7, 4 }
 0x170   : > { %s319_s10 = scalar_lea.hbm %s1581_s1, %s561_s12 }
 0x171   : > { %s969_s9 = scalar_lea.hbm %s319_s10, 16  ;;  %p972_p4 = scmp.lt.u32.totalorder %s319_s10, %s1581_s1 }
 0x172   : > { %p970_p12 = scmp.ne.s32.totalorder %s319_s10, %s969_s9  ;;  %p973_p9 = scmp.lt.u32.totalorder %s1203_s30, %s969_s9 }
 0x173   : > { %p975_p1 = scmp.lt.u32.totalorder %s969_s9, %s319_s10 }
 0x174   : > { %p974_p2 = por %p973_p9, %p972_p4 }
 0x176   : > { %p976_p8 = por %p975_p1, %p974_p2 }
 0x178   : > { %p977_p10 = pnand %p976_p8, %p970_p12 }
 0x17a   : > { %980 = shalt.err (!%p977_p10)  }
 0x17b   : > { %s981_s24 = scalar_lea.vmem %s1486_s18, 16  ;;  %p986_p0 = scmp.lt.s32.totalorder %s1486_s18, %s1211_s15 }
 0x17c   : > { %p982_p11 = scmp.ne.s32.totalorder %s1486_s18, %s981_s24  ;;  %p987_p3 = scmp.lt.s32.totalorder %s1214_s16, %s981_s24 }
 0x17e   : > { %p988_p5 = por %p987_p3, %p986_p0 }
 0x180   : > { %p989_p6 = pnand %p988_p5, %p982_p11 }
 0x182   : > { %992 = shalt.err (!%p989_p6)  }
 0x183   : > { %331 = dma.hbm_to_vmem [thread:$0]  %s319_s10, 16, %s1486_s18, [#allocation2] }
 0x184   : > { %s1646_s4 = smov (!%p562_p13, %s335_s4), 31  ;;  %s353_s29 = sld [smem:[#allocation4 + %s352_s14]] }
 0x185   : > { %s567_s13 = sshll.u32 %s1646_s4, 4 }
 0x186   : > { %s339_s0 = scalar_lea.hbm %s1581_s1, %s567_s13 }
 0x187   : > { %s993_s12 = scalar_lea.hbm %s339_s0, 16  ;;  %p996_p4 = scmp.lt.u32.totalorder %s339_s0, %s1581_s1 }
 0x188   : > { %p994_p12 = scmp.ne.s32.totalorder %s339_s0, %s993_s12  ;;  %p997_p9 = scmp.lt.u32.totalorder %s1203_s30, %s993_s12 }
 0x189   : > { %p999_p1 = scmp.lt.u32.totalorder %s993_s12, %s339_s0 }
 0x18a   : > { %p998_p2 = por %p997_p9, %p996_p4 }
 0x18c   : > { %p1000_p8 = por %p999_p1, %p998_p2 }
 0x18e   : > { %p1001_p10 = pnand %p1000_p8, %p994_p12 }
 0x190   : > { %1004 = shalt.err (!%p1001_p10)  }
 0x191   : > { %s1005_s18 = scalar_lea.vmem %s349_s23, 16  ;;  %p1010_p11 = scmp.lt.s32.totalorder %s349_s23, %s1211_s15 }
 0x192   : > { %p1006_p13 = scmp.ne.s32.totalorder %s349_s23, %s1005_s18  ;;  %p1011_p0 = scmp.lt.s32.totalorder %s1214_s16, %s1005_s18 }
 0x194   : > { %p1012_p3 = por %p1011_p0, %p1010_p11 }
 0x196   : > { %p1013_p5 = pnand %p1012_p3, %p1006_p13 }
 0x198   : > { %1016 = shalt.err (!%p1013_p5)  }
 0x199   : > { %351 = dma.hbm_to_vmem [thread:$0]  %s339_s0, 16, %s349_s23, [#allocation2] }
 0x19a   : > { %s360_s3 = scalar_lea.vmem %s1177_s5, 15 [#allocation5]  ;;  %p354_p6 = scmp.gt.s32.totalorder %s353_s29, 0 }
 0x19b   : > { %p568_p7 = scmp.lt.s32.totalorder %s353_s29, 31  ;;  %s368_s4 = sshll.u32 %s360_s3, 4  ;;  %s369_s4 = int_to_ptr.vmem [resolvable:$true] %s368_s4 }
 0x19c   : > { %s1648_s29 = smov (!%p354_p6, %s353_s29), 0 }
 0x19d   : > { %s1650_s29 = smov (!%p568_p7, %s1648_s29), 31 }
 0x19e   : > { %s573_s10 = sshll.u32 %s1650_s29, 4 }
 0x19f   : > { %s359_s8 = scalar_lea.hbm %s1581_s1, %s573_s10 }
 0x1a0   : > { %s1017_s25 = scalar_lea.hbm %s359_s8, 16  ;;  %p1020_p4 = scmp.lt.u32.totalorder %s359_s8, %s1581_s1 }
 0x1a1   : > { %p1018_p12 = scmp.ne.s32.totalorder %s359_s8, %s1017_s25  ;;  %p1021_p9 = scmp.lt.u32.totalorder %s1203_s30, %s1017_s25 }
 0x1a2   : > { %p1023_p1 = scmp.lt.u32.totalorder %s1017_s25, %s359_s8 }
 0x1a3   : > { %p1022_p2 = por %p1021_p9, %p1020_p4 }
 0x1a5   : > { %p1024_p8 = por %p1023_p1, %p1022_p2 }
 0x1a7   : > { %p1025_p10 = pnand %p1024_p8, %p1018_p12 }
 0x1a9   : > { %1028 = shalt.err (!%p1025_p10)  }
 0x1aa   : > { %s1029_s5 = scalar_lea.vmem %s369_s4, 16  ;;  %p1034_p13 = scmp.lt.s32.totalorder %s369_s4, %s1211_s15 }
 0x1ab   : > { %p1030_p7 = scmp.ne.s32.totalorder %s369_s4, %s1029_s5  ;;  %p1035_p11 = scmp.lt.s32.totalorder %s1214_s16, %s1029_s5 }
 0x1ad   : > { %p1036_p0 = por %p1035_p11, %p1034_p13 }
 0x1af   : > { %p1037_p3 = pnand %p1036_p0, %p1030_p7 }
 0x1b1   : > { %1040 = shalt.err (!%p1037_p3)  }
 0x1b2   : > { %371 = dma.hbm_to_vmem [thread:$0]  %s359_s8, 16, %s369_s4, [#allocation2] }
 0x1b3   : > { %1083 = dma.done.wait [#allocation2], 256 }
 0x1b4   : > { %1084 = vsyncadd [#allocation2], 4294967040  ;;  %s612_s30 = sshll.u32 %s1099_s21, 8  ;;  %s1599_s7 = sand.u32 1, %s1095_s20  }
 0x1b5   : > { %s388_s11 = scalar_lea.hbm %s1582_s2, %s612_s30  ;;  %s376_s0 = scalar_lea.sflag [#allocation6], %s1599_s7 }
 0x1b6   : > { %s1041_s12 = scalar_lea.vmem %s1182_s6, 256  ;;  %p1600_p6 = scmp.ne.s32.totalorder %s1587_s26, 0 }
 0x1b7   : > { %p1042_p5 = scmp.ne.s32.totalorder %s1182_s6, %s1041_s12  ;;  %p1049_p9 = scmp.lt.s32.totalorder %s1214_s16, %s1041_s12 }
 0x1b8   : > { %p1601_p2 = scmp.lt.s32.totalorder %s1182_s6, %s1211_s15 }
 0x1b9   : > { %p1043_p12 = pnand %p1042_p5, %p1600_p6 }
 0x1ba   : > { %p1050_p1 = por %p1049_p9, %p1601_p2 }
 0x1bb   : > { %p1044_p4 = pneg %p1043_p12 }
 0x1bd   : > { %p1051_p8 = pnand %p1050_p1, %p1044_p4 }
 0x1bf   : > { %1054 = shalt.err (!%p1051_p8)
}
 0x1c0   : > { %s1055_s28 = scalar_lea.hbm %s388_s11, 256  ;;  %s1059_s3 = scalar_lea.hbm %s1582_s2, 512 }
 0x1c1   : > { %p1056_p10 = scmp.ne.s32.totalorder %s388_s11, %s1055_s28  ;;  %p1060_p11 = scmp.lt.u32.totalorder %s388_s11, %s1582_s2 }
 0x1c2   : > { %p1061_p0 = scmp.lt.u32.totalorder %s1059_s3, %s1055_s28  ;;  %p1063_p5 = scmp.lt.u32.totalorder %s1055_s28, %s388_s11 }
 0x1c3   : > { %p1057_p7 = pnand %p1056_p10, %p1600_p6 }
 0x1c4   : > { %p1062_p3 = por %p1061_p0, %p1060_p11 }
 0x1c5   : > { %p1058_p13 = pneg %p1057_p7 }
 0x1c6   : > { %p1064_p12 = por %p1063_p5, %p1062_p3 }
 0x1c8   : > { %p1065_p4 = pnand %p1064_p12, %p1058_p13 }
 0x1ca   : > { %1068 = shalt.err (!%p1065_p4)
}
 0x1cb   : > { %s1103_s15 = smov 128   ;;  %s1104_s16 = smov 8  }
 0x1cc   : > { %613 = dma.vmem_to_hbm [thread:$0]  (%p1600_p6), %s1182_s6, 256, %s388_s11, %s376_s0, %s1103_s15, %s1103_s15, %s1104_s16  }
 0x1cd PF: > { %p619_p9 = scmp.ge.s32.totalorder %s1099_s21, 1  ;;  %s404_s14 = sand.u32 1, %s1091_s19  }
 0x1ce   : > { %p1602_p2 = scmp.ne.s32.totalorder %s1588_s27, 0  ;;  %s405_s9 = scalar_lea.sflag [#allocation6], %s404_s14 }
 0x1d0   : > { %p616_p1 = pnand %p619_p9, %p1602_p2 }
 0x1d2   : > { %1086 = dma.done.wait (!%p616_p1), %s405_s9, 256  }
 0x1d3   : > { %1088 = vsyncadd (!%p616_p1), %s405_s9, 4294967040  ;;  %s1603_s8 = sld [smem:[#allocation44_spill]]  ;;  %p16_p8 = scmp.ge.s32.totalorder %s1149_s22, 3  }
 0x1d4   : > { %s1604_s19 = smov %s1095_s20  ;;  %s1606_s21 = smov %s1149_s22 }
 0x1d5   :  { %18 = sbr.rel (!%p16_p8) target bundleno = 15 (0xf), region = 139 }
 0x1d9   : > { %s1605_s20 = smov %s1603_s8 }
 0x1dc   :  { %410 = vsyncpa [#allocation6], 1 }
 0x1dd   :  { %412 = vsyncpa [#allocation6 + $0x1], 1 }
 0x1de   :  { %413 = vsyncmov [#allocation2] }
 0x1e1   :  { %s414_s21 = vpop.sfrf %413 }
 0x1e2   :  { %p579_p6 = scmp.ne.s32.totalorder %s414_s21, 0 }
 0x1e4   :  { %418 = shalt.err (%p579_p6)  }

</bundles_post_ra>
